<compile_context>
chip_gen: v7x
topology: tpu7x:2x2x1
jax: 0.10.0
libtpu: 0.0.40
codegen_flags: <defaults>
</compile_context>

<pallas_src>
import jax
import jax.numpy as jnp
from jax.experimental import pallas as pl
from jax.experimental.pallas import tpu as pltpu

NUM_CORES = 2                    # leading "parallel" grid axis (v7x megacore split)
_VMEM_TILE_BUDGET = 16 * 2**20   # conservative per-step working-set budget (v5e..v7x safe)


def _round_up(x, m):
    return ((x + m - 1) // m) * m


def distillation_loss(scores, labels, teacher_scores, temperature, alpha, *, tile_n=None):
    """scores: [N, C] float, labels: [N] int, teacher_scores: [N, C] float."""
    N, C = scores.shape
    temperature = float(temperature)   # compile-time hyperparameters (Python floats in
    alpha = float(alpha)               # the PyTorch forward signature)

    # ---- choose the row tile: big enough to amortize per-step overhead, small enough
    # ---- that 2 inputs x 2 pipeline buffers + ~6 f32 temporaries fit VMEM on all gens.
    if tile_n is None:
        bytes_per_row = C * 4 * 10     # rough: (2 in x 2 buf) + ~6 live f32 temporaries
        tile_n = max(8, min(1024, _VMEM_TILE_BUDGET // max(bytes_per_row, 1)))
    tile_n = min(int(tile_n), _round_up(pl.cdiv(N, NUM_CORES), 8))
    tile_n = max(8, (tile_n // 8) * 8)

    tiles_per_core = pl.cdiv(N, NUM_CORES * tile_n)
    n_pad = NUM_CORES * tiles_per_core * tile_n

    def pad_rows(x):
        if n_pad == N:
            return x
        pad = ((0, n_pad - N),) + ((0, 0),) * (x.ndim - 1)
        return jnp.pad(x, pad)

    scores_p = pad_rows(scores)
    teacher_p = pad_rows(teacher_scores)
    labels_p = pad_rows(labels.astype(jnp.int32).reshape(N, 1))

    inv_T = 1.0 / temperature
    need_mask = n_pad != N

    def kernel(scores_ref, teacher_ref, labels_ref, out_ref, hard_acc, kl_acc):
        c = pl.program_id(0)
        t = pl.program_id(1)

        @pl.when(t == 0)
        def _init():
            hard_acc[...] = jnp.zeros_like(hard_acc)
            kl_acc[...] = jnp.zeros_like(kl_acc)

        s = scores_ref[...].astype(jnp.float32)       # [tile_n, C]
        te = teacher_ref[...].astype(jnp.float32)     # [tile_n, C]
        lab = labels_ref[...]                         # [tile_n, 1] int32

        # ---- student: shared max / centering for hard and soft paths ------------
        m = jnp.max(s, axis=-1, keepdims=True)                     # [tile_n, 1]
        z = s - m                                                   # [tile_n, C]
        lse = jnp.log(jnp.sum(jnp.exp(z), axis=-1, keepdims=True))  # [tile_n, 1]

        # hard loss per row:  CE_i = lse_i - z_i[label_i]
        col = jax.lax.broadcasted_iota(jnp.int32, (tile_n, C), 1)
        z_label = jnp.sum(jnp.where(col == lab, z, 0.0), axis=-1, keepdims=True)
        hard_rows = lse - z_label                                   # [tile_n, 1]

        # soft path reuses the centering: max(s/T) = max(s)/T for T > 0.
        zT = z * inv_T
        lseT = jnp.log(jnp.sum(jnp.exp(zT), axis=-1, keepdims=True))   # logq = zT - lseT

        # ---- teacher in log domain (no p, no log(p), no N*C divide, no 0*log0) --
        mt = jnp.max(te, axis=-1, keepdims=True)
        ut = (te - mt) * inv_T                       # = t/T - max(t/T)
        pt = jnp.exp(ut)                             # unnormalized teacher probs
        sum_pt = jnp.sum(pt, axis=-1, keepdims=True)
        lse_t = jnp.log(sum_pt)
        inner = jnp.sum(pt * (ut - zT), axis=-1, keepdims=True)
        # KL_i = sum_j p_j (log p_j - log q_j) = inner/sum_pt + lseT - lse_t
        kl_rows = inner / sum_pt + lseT - lse_t      # [tile_n, 1]

        if need_mask:   # mask rows that are batch padding (use the GLOBAL row index)
            row0 = (c * tiles_per_core + t) * tile_n
            rows = row0 + jax.lax.broadcasted_iota(jnp.int32, (tile_n, 1), 0)
            valid = (rows < N).astype(jnp.float32)
            hard_rows = hard_rows * valid
            kl_rows = kl_rows * valid

        hard_acc[...] += hard_rows
        kl_acc[...] += kl_rows

        @pl.when(t == pl.num_programs(1) - 1)
        def _finalize():
            hard_sum = jnp.sum(hard_acc[...])
            kl_sum = jnp.sum(kl_acc[...])
            # normalize with GLOBAL sizes; each core's partial is summed in the wrapper.
            hard_loss = hard_sum * (1.0 / N)
            soft_loss = kl_sum * (1.0 / (N * C)) * (temperature * temperature * 2.0)
            partial = alpha * soft_loss + (1.0 - alpha) * hard_loss
            out_ref[...] = jnp.zeros((8, 128), jnp.float32) + partial   # lane-dense block

        del c  # (only used when need_mask)

    out = pl.pallas_call(
        kernel,
        out_shape=jax.ShapeDtypeStruct((NUM_CORES * 8, 128), jnp.float32),
        grid=(NUM_CORES, tiles_per_core),
        in_specs=[
            pl.BlockSpec((tile_n, C), lambda c, t: (c * tiles_per_core + t, 0)),
            pl.BlockSpec((tile_n, C), lambda c, t: (c * tiles_per_core + t, 0)),
            pl.BlockSpec((tile_n, 1), lambda c, t: (c * tiles_per_core + t, 0)),
        ],
        out_specs=pl.BlockSpec((8, 128), lambda c, t: (c, 0)),
        scratch_shapes=[
            pltpu.VMEM((tile_n, 1), jnp.float32),   # per-core hard-loss row accumulator
            pltpu.VMEM((tile_n, 1), jnp.float32),   # per-core KL row accumulator
        ],
        compiler_params=pltpu.CompilerParams(
            dimension_semantics=("parallel", "arbitrary"),
            vmem_limit_bytes=64 * 1024 * 1024,
        ),
    )(scores_p, teacher_p, labels_p)

    partials = out.reshape(NUM_CORES, 8, 128)[:, 0, 0]
    return jnp.sum(partials)


def _reference(scores, labels, teacher_scores, T, alpha):
    # Pure-JAX reference reproducing the PyTorch semantics (0-target KL terms -> 0).
    logp = jax.nn.log_softmax(scores, axis=1)
    hard = -jnp.mean(jnp.take_along_axis(logp, labels[:, None].astype(jnp.int32), axis=1))
    logq = jax.nn.log_softmax(scores / T, axis=1)
    p = jax.nn.softmax(teacher_scores / T, axis=1)
    kl_elem = jnp.where(p > 0, p * (jnp.log(jnp.maximum(p, 1e-38)) - logq), 0.0)
    kl = jnp.mean(kl_elem)                     # KLDivLoss 'mean' = mean over all elements
    soft = kl * (T * T * 2.0)
    return soft * alpha + hard * (1.0 - alpha)


if __name__ == "__main__":
    key = jax.random.PRNGKey(0)

    configs = [
        (8, 32, 4.0, 0.7),     # small, C < 128
        (37, 128, 2.0, 0.3),   # non-multiple batch -> exercises row padding / masking
    ]
    ok = True
    for idx, (N, C, T, A) in enumerate(configs):
        k1, k2, k3 = jax.random.split(jax.random.fold_in(key, idx), 3)
        scores = jax.random.normal(k1, (N, C), dtype=jnp.float32)
        teacher_scores = jax.random.normal(k2, (N, C), dtype=jnp.float32)
        labels = jax.random.randint(k3, (N,), 0, C, dtype=jnp.int32)

        loss = distillation_loss(scores, labels, teacher_scores, T, A)
        jax.block_until_ready(loss)

        ref = _reference(scores, labels, teacher_scores, T, A)
        if not jnp.allclose(loss, ref, rtol=1e-5, atol=1e-5):
            ok = False
            print("MISMATCH", (N, C), float(loss), float(ref))

    assert ok
    print("KERNEL_OK")
</pallas_src>

<mosaic_0001>
module attributes {stable_mosaic.version = 11 : i64} {
  func.func @kernel(%arg0: i32, %arg1: i32, %arg2: memref<8x32xf32, #tpu.memory_space<vmem>>, %arg3: memref<8x32xf32, #tpu.memory_space<vmem>>, %arg4: memref<8x1xi32, #tpu.memory_space<vmem>>, %arg5: memref<8x128xf32, #tpu.memory_space<vmem>>, %arg6: memref<8x1xf32, #tpu.memory_space<vmem>>, %arg7: memref<8x1xf32, #tpu.memory_space<vmem>>) attributes {dimension_semantics = [#tpu.dimension_semantics<parallel>, #tpu.dimension_semantics<arbitrary>], iteration_bounds = array<i64: 2, 1>, scalar_prefetch = 0 : i64, scratch_operands = 2 : i64, tpu.core_type = #tpu.core_type<tc>, window_params = [{transform_indices = @transform_0, window_bounds = array<i64: 8, 32>}, {transform_indices = @transform_1, window_bounds = array<i64: 8, 32>}, {transform_indices = @transform_2, window_bounds = array<i64: 8, 1>}, {transform_indices = @transform_3, window_bounds = array<i64: 8, 128>}]} {
    %c0_i32 = arith.constant 0 : i32
    %0 = arith.cmpi eq, %arg1, %c0_i32 : i32
    %1 = arith.extui %0 : i1 to i32
    %c0_i32_0 = arith.constant 0 : i32
    %2 = arith.cmpi ne, %1, %c0_i32_0 : i32
    scf.if %2 {
      %cst_26 = arith.constant 0.000000e+00 : f32
      %66 = vector.broadcast %cst_26 : f32 to vector<8x1xf32>
      %c0_27 = arith.constant 0 : index
      %c0_28 = arith.constant 0 : index
      %67 = vector.load %arg6[%c0_27, %c0_28] : memref<8x1xf32, #tpu.memory_space<vmem>>, vector<8x1xf32>
      tpu.vector_store %arg6[%c0_27, %c0_28], %66 {strides = array<i32>} : memref<8x1xf32, #tpu.memory_space<vmem>>, vector<8x1xf32>,
      %cst_29 = arith.constant 0.000000e+00 : f32
      %68 = vector.broadcast %cst_29 : f32 to vector<8x1xf32>
      %c0_30 = arith.constant 0 : index
      %c0_31 = arith.constant 0 : index
      %69 = vector.load %arg7[%c0_30, %c0_31] : memref<8x1xf32, #tpu.memory_space<vmem>>, vector<8x1xf32>
      tpu.vector_store %arg7[%c0_30, %c0_31], %68 {strides = array<i32>} : memref<8x1xf32, #tpu.memory_space<vmem>>, vector<8x1xf32>,
    } else {
    }
    %c0 = arith.constant 0 : index
    %c0_1 = arith.constant 0 : index
    %3 = vector.load %arg2[%c0, %c0_1] : memref<8x32xf32, #tpu.memory_space<vmem>>, vector<8x32xf32>
    %c0_2 = arith.constant 0 : index
    %c0_3 = arith.constant 0 : index
    %4 = vector.load %arg3[%c0_2, %c0_3] : memref<8x32xf32, #tpu.memory_space<vmem>>, vector<8x32xf32>
    %c0_4 = arith.constant 0 : index
    %c0_5 = arith.constant 0 : index
    %5 = vector.load %arg4[%c0_4, %c0_5] : memref<8x1xi32, #tpu.memory_space<vmem>>, vector<8x1xi32>
    %cst = arith.constant dense<0xFF800000> : vector<8xf32>
    %6 = vector.multi_reduction <maximumf>, %3, %cst [1] : vector<8x32xf32> to vector<8xf32>
    %7 = vector.shape_cast %6 : vector<8xf32> to vector<8x1xf32>
    %8 = vector.broadcast %7 : vector<8x1xf32> to vector<8x32xf32>
    %9 = arith.subf %3, %8 : vector<8x32xf32>
    %10 = math.exp %9 : vector<8x32xf32>
    %cst_6 = arith.constant dense<0.000000e+00> : vector<8xf32>
    %11 = vector.multi_reduction <add>, %10, %cst_6 [1] : vector<8x32xf32> to vector<8xf32>
    %12 = vector.shape_cast %11 : vector<8xf32> to vector<8x1xf32>
    %13 = math.log %12 : vector<8x1xf32>
    %14 = tpu.iota {dimensions = array<i32: 1>} : vector<8x32xi32>
    %15 = vector.broadcast %5 : vector<8x1xi32> to vector<8x32xi32>
    %16 = arith.cmpi eq, %14, %15 : vector<8x32xi32>
    %cst_7 = arith.constant 0.000000e+00 : f32
    %17 = vector.broadcast %cst_7 : f32 to vector<8x32xf32>
    %18 = arith.select %16, %9, %17 : vector<8x32xi1>, vector<8x32xf32>
    %cst_8 = arith.constant dense<0.000000e+00> : vector<8xf32>
    %19 = vector.multi_reduction <add>, %18, %cst_8 [1] : vector<8x32xf32> to vector<8xf32>
    %20 = vector.shape_cast %19 : vector<8xf32> to vector<8x1xf32>
    %21 = arith.subf %13, %20 : vector<8x1xf32>
    %cst_9 = arith.constant 2.500000e-01 : f32
    %22 = vector.broadcast %cst_9 : f32 to vector<8x32xf32>
    %23 = arith.mulf %9, %22 : vector<8x32xf32>
    %24 = math.exp %23 : vector<8x32xf32>
    %cst_10 = arith.constant dense<0.000000e+00> : vector<8xf32>
    %25 = vector.multi_reduction <add>, %24, %cst_10 [1] : vector<8x32xf32> to vector<8xf32>
    %26 = vector.shape_cast %25 : vector<8xf32> to vector<8x1xf32>
    %27 = math.log %26 : vector<8x1xf32>
    %cst_11 = arith.constant dense<0xFF800000> : vector<8xf32>
    %28 = vector.multi_reduction <maximumf>, %4, %cst_11 [1] : vector<8x32xf32> to vector<8xf32>
    %29 = vector.shape_cast %28 : vector<8xf32> to vector<8x1xf32>
    %30 = vector.broadcast %29 : vector<8x1xf32> to vector<8x32xf32>
    %31 = arith.subf %4, %30 : vector<8x32xf32>
    %cst_12 = arith.constant 2.500000e-01 : f32
    %32 = vector.broadcast %cst_12 : f32 to vector<8x32xf32>
    %33 = arith.mulf %31, %32 : vector<8x32xf32>
    %34 = math.exp %33 : vector<8x32xf32>
    %cst_13 = arith.constant dense<0.000000e+00> : vector<8xf32>
    %35 = vector.multi_reduction <add>, %34, %cst_13 [1] : vector<8x32xf32> to vector<8xf32>
    %36 = vector.shape_cast %35 : vector<8xf32> to vector<8x1xf32>
    %37 = math.log %36 : vector<8x1xf32>
    %38 = arith.subf %33, %23 : vector<8x32xf32>
    %39 = arith.mulf %34, %38 : vector<8x32xf32>
    %cst_14 = arith.constant dense<0.000000e+00> : vector<8xf32>
    %40 = vector.multi_reduction <add>, %39, %cst_14 [1] : vector<8x32xf32> to vector<8xf32>
    %41 = vector.shape_cast %40 : vector<8xf32> to vector<8x1xf32>
    %42 = arith.divf %41, %36 : vector<8x1xf32>
    %43 = arith.addf %42, %27 : vector<8x1xf32>
    %44 = arith.subf %43, %37 : vector<8x1xf32>
    %c1_i32 = arith.constant 1 : i32
    %45 = arith.muli %arg0, %c1_i32 : i32
    %46 = arith.addi %45, %arg1 : i32
    %c8_i32 = arith.constant 8 : i32
    %47 = arith.muli %46, %c8_i32 : i32
    %48 = tpu.iota {dimensions = array<i32: 0>} : vector<8x1xi32>
    %49 = vector.broadcast %47 : i32 to vector<8x1xi32>
    %50 = arith.addi %49, %48 : vector<8x1xi32>
    %c8_i32_15 = arith.constant 8 : i32
    %51 = vector.broadcast %c8_i32_15 : i32 to vector<8x1xi32>
    %52 = arith.cmpi slt, %50, %51 : vector<8x1xi32>
    %53 = arith.extui %52 : vector<8x1xi1> to vector<8x1xi32>
    %54 = arith.sitofp %53 : vector<8x1xi32> to vector<8x1xf32>
    %55 = arith.mulf %21, %54 : vector<8x1xf32>
    %56 = arith.mulf %44, %54 : vector<8x1xf32>
    %c0_16 = arith.constant 0 : index
    %c0_17 = arith.constant 0 : index
    %57 = vector.load %arg6[%c0_16, %c0_17] : memref<8x1xf32, #tpu.memory_space<vmem>>, vector<8x1xf32>
    %58 = arith.addf %57, %55 : vector<8x1xf32>
    %c0_18 = arith.constant 0 : index
    %c0_19 = arith.constant 0 : index
    %59 = vector.load %arg6[%c0_18, %c0_19] : memref<8x1xf32, #tpu.memory_space<vmem>>, vector<8x1xf32>
    tpu.vector_store %arg6[%c0_18, %c0_19], %58 {strides = array<i32>} : memref<8x1xf32, #tpu.memory_space<vmem>>, vector<8x1xf32>,
    %c0_20 = arith.constant 0 : index
    %c0_21 = arith.constant 0 : index
    %60 = vector.load %arg7[%c0_20, %c0_21] : memref<8x1xf32, #tpu.memory_space<vmem>>, vector<8x1xf32>
    %61 = arith.addf %60, %56 : vector<8x1xf32>
    %c0_22 = arith.constant 0 : index
    %c0_23 = arith.constant 0 : index
    %62 = vector.load %arg7[%c0_22, %c0_23] : memref<8x1xf32, #tpu.memory_space<vmem>>, vector<8x1xf32>
    tpu.vector_store %arg7[%c0_22, %c0_23], %61 {strides = array<i32>} : memref<8x1xf32, #tpu.memory_space<vmem>>, vector<8x1xf32>,
    %c0_i32_24 = arith.constant 0 : i32
    %63 = arith.cmpi eq, %arg1, %c0_i32_24 : i32
    %64 = arith.extui %63 : i1 to i32
    %c0_i32_25 = arith.constant 0 : i32
    %65 = arith.cmpi ne, %64, %c0_i32_25 : i32
    scf.if %65 {
      %c0_26 = arith.constant 0 : index
      %c0_27 = arith.constant 0 : index
      %66 = vector.load %arg6[%c0_26, %c0_27] : memref<8x1xf32, #tpu.memory_space<vmem>>, vector<8x1xf32>
      %67 = vector.shape_cast %66 : vector<8x1xf32> to vector<1x8x1xf32>
      %cst_28 = arith.constant dense<0.000000e+00> : vector<1xf32>
      %68 = vector.multi_reduction <add>, %67, %cst_28 [1, 2] : vector<1x8x1xf32> to vector<1xf32>
      %69 = vector.shape_cast %68 : vector<1xf32> to vector<1x1x1xf32>
      %70 = vector.extract %69[0, 0, 0] : f32 from vector<1x1x1xf32>
      %c0_29 = arith.constant 0 : index
      %c0_30 = arith.constant 0 : index
      %71 = vector.load %arg7[%c0_29, %c0_30] : memref<8x1xf32, #tpu.memory_space<vmem>>, vector<8x1xf32>
      %72 = vector.shape_cast %71 : vector<8x1xf32> to vector<1x8x1xf32>
      %cst_31 = arith.constant dense<0.000000e+00> : vector<1xf32>
      %73 = vector.multi_reduction <add>, %72, %cst_31 [1, 2] : vector<1x8x1xf32> to vector<1xf32>
      %74 = vector.shape_cast %73 : vector<1xf32> to vector<1x1x1xf32>
      %75 = vector.extract %74[0, 0, 0] : f32 from vector<1x1x1xf32>
      %cst_32 = arith.constant 1.250000e-01 : f32
      %76 = arith.mulf %70, %cst_32 : f32
      %cst_33 = arith.constant 3.906250e-03 : f32
      %77 = arith.mulf %75, %cst_33 : f32
      %cst_34 = arith.constant 3.200000e+01 : f32
      %78 = arith.mulf %77, %cst_34 : f32
      %cst_35 = arith.constant 0.699999988 : f32
      %79 = arith.mulf %cst_35, %78 : f32
      %cst_36 = arith.constant 3.000000e-01 : f32
      %80 = arith.mulf %cst_36, %76 : f32
      %81 = arith.addf %79, %80 : f32
      %cst_37 = arith.constant 0.000000e+00 : f32
      %82 = vector.broadcast %cst_37 : f32 to vector<8x128xf32>
      %83 = vector.broadcast %81 : f32 to vector<8x128xf32>
      %84 = arith.addf %82, %83 : vector<8x128xf32>
      %c0_38 = arith.constant 0 : index
      %c0_39 = arith.constant 0 : index
      %85 = vector.load %arg5[%c0_38, %c0_39] : memref<8x128xf32, #tpu.memory_space<vmem>>, vector<8x128xf32>
      tpu.vector_store %arg5[%c0_38, %c0_39], %84 {strides = array<i32>} : memref<8x128xf32, #tpu.memory_space<vmem>>, vector<8x128xf32>,
    } else {
    }
    return
  }
  func.func @transform_0(%arg0: i32, %arg1: i32) -> (i32, i32) {
    %c1_i32 = arith.constant 1 : i32
    %0 = arith.muli %arg0, %c1_i32 : i32
    %1 = arith.addi %0, %arg1 : i32
    %c0_i32 = arith.constant 0 : i32
    %c0_i32_0 = arith.constant 0 : i32
    return %1, %c0_i32 : i32, i32
  }
  func.func @transform_1(%arg0: i32, %arg1: i32) -> (i32, i32) {
    %c1_i32 = arith.constant 1 : i32
    %0 = arith.muli %arg0, %c1_i32 : i32
    %1 = arith.addi %0, %arg1 : i32
    %c0_i32 = arith.constant 0 : i32
    %c0_i32_0 = arith.constant 0 : i32
    return %1, %c0_i32 : i32, i32
  }
  func.func @transform_2(%arg0: i32, %arg1: i32) -> (i32, i32) {
    %c1_i32 = arith.constant 1 : i32
    %0 = arith.muli %arg0, %c1_i32 : i32
    %1 = arith.addi %0, %arg1 : i32
    %c0_i32 = arith.constant 0 : i32
    %c0_i32_0 = arith.constant 0 : i32
    return %1, %c0_i32 : i32, i32
  }
  func.func @transform_3(%arg0: i32, %arg1: i32) -> (i32, i32) {
    %c0_i32 = arith.constant 0 : i32
    %c0_i32_0 = arith.constant 0 : i32
    return %arg0, %c0_i32 : i32, i32
  }
}

</mosaic_0001>

<bundles_post_ra>
// kernel: tpu_custom_call.1
= control target key start
LH: loop header
LB: loop body
LE: loop exit
PB: predicated region body
PF: predicated region fallthrough
CT: control target
= control target key end

     0   :  { %s1130_s0 = inlined_call_operand.hbm [shape: f32[16,32], index: 0, kind: input, shape index: {}]   ;;  %s1131_s1 = inlined_call_operand.hbm [shape: f32[16,32], index: 1, kind: input, shape index: {}]   ;;  %s1132_s2 = inlined_call_operand.hbm [shape: s32[16,1], index: 2, kind: input, shape index: {}]   ;;  %s1133_s3 = inlined_call_operand.hbm [shape: f32[16,128], index: 3, kind: output, shape index: {}]  }
   0x1   :  { %1139 = sst [smem:[#allocation17_spill]] %s1131_s1 }
   0x2   :  { %8 = vsyncpa [#allocation5], 0 }
   0x3   :  { %10 = vsyncpa [#allocation5 + $0x1], 0 }
   0x4   :  { %11 = vsyncpa [#allocation8], 0 }
   0x5   :  { %13 = vsyncpa [#allocation8 + $0x1], 0 }
   0x6   :  { %14 = vsyncpa [#allocation6], 0 }
   0x7   :  { %16 = vsyncpa [#allocation6 + $0x1], 0  ;;  %s852_s12 = smov 0   ;;  %s854_s13 = smov 0  }
   0x8   :  { %s856_s14 = smov 0   ;;  %s858_s15 = smov 0  }
   0x9   :  { %s860_s16 = smov 0   ;;  %s862_s17 = smov 0  }
   0xa LB: > { %1140 = sst [smem:[#allocation14_spill]] %s820_s16  ;;  %s883_s18 = sadd.s32 4294967295, %s824_s17   ;;  %s824_s17 = sphi %s862_s17, %s22_s17   ;;  %s820_s16 = sphi %s860_s16, %s1161_s16   ;;  %s816_s15 = sphi %s858_s15, %s1160_s15   ;;  %s812_s14 = sphi %s856_s14, %s1164_s14   ;;  %s808_s13 = sphi %s854_s13, %s1163_s13   ;;  %s804_s12 = sphi %s852_s12, %s1162_s12  }
   0xb   : > { %s534_s19 = sadd.s32 4294967294, %s824_s17   ;;  %s34_s20 = sadd.s32 1, %s820_s16 }
   0xc   : > { %s43_s21 = sadd.s32 1, %s812_s14  ;;  %p36_p0 = scmp.ge.s32.totalorder %s34_s20, 2 }
   0xd   : > { %p50_p1 = scmp.ne.s32.totalorder %s812_s14, %s808_s13  ;;  %p51_p2 = scmp.eq.s32.totalorder %s824_s17, 0 }
   0xe   : > { %p56_p3 = scmp.ne.s32.totalorder %s808_s13, %s804_s12  ;;  %s1166_s20 = smov (%p36_p0, %s34_s20), 0 }
   0xf   : > { %1141 = sst [smem:[#allocation15_spill]] %s1166_s20  ;;  %p895_p4 = por %p51_p2, %p50_p1 }
  0x10   : > { %p57_p5 = scmp.eq.s32.totalorder %s883_s18, 0  ;;  %s40_s23 = ssub.s32 %s820_s16, %s1166_s20 }
  0x11   : > { %p136_p6 = scmp.eq.s32.totalorder %s883_s18, 1  ;;  %p41_p7 = scmp.eq.s32.totalorder %s40_s23, 0 }
  0x12   : > { %p903_p8 = por %p57_p5, %p56_p3  ;;  %p142_p10 = scmp.eq.s32.totalorder %s534_s19, 1 }
  0x13   : > { %p907_p9 = por %p136_p6, %p50_p1  ;;  %p580_p13 = scmp.lt.s32.totalorder %s824_s17, 2 }
  0x14   : > { %s1143_s24 = scalar_select %p903_p8, 1, 0 }
  0x15   : > { %s1144_s25 = scalar_select %p907_p9, 1, 0 }
  0x16   : > { %s912_s26 = scalar_select %p41_p7, %s812_s14, %s43_s21  }
  0x17   : > { %p914_p11 = por %p142_p10, %p56_p3  ;;  %s162_s28 = sand.u32 1, %s812_s14  }
  0x18   : > { %1145 = sst [smem:[#allocation16_spill]] %s912_s26  ;;  %s923_s29 = sshll.u32 %s162_s28, 3 }
  0x19   : > { %s1146_s27 = scalar_select %p914_p11, 1, 0 }
  0x1a   : > { %s926_s30 = sshll.u32 %s820_s16, 7  ;;  %p930_p0 = pnand %p580_p13, %p895_p4 }
  0x1b   : > { %s181_s5 = sand.u32 1, %s824_s17   ;;  %s1148_s1 = sld [smem:[#allocation17_spill]] }
  0x1c   : > { %s1147_s4 = scalar_select %p930_p0, 1, 0 }
  0x1d   : > { %s185_s9 = scalar_lea.vmem [#allocation7], %s923_s29  ;;  %s946_s11 = scalar_lea.sflag [#allocation8], %s181_s5 }
  0x1e   : > { %s193_s10 = sshll.u32 %s185_s9, 4  ;;  %p952_p4 = pneg %p930_p0  ;;  %s943_s10 = int_to_ptr.vmem [resolvable:$true] %s193_s10 }
  0x21   : > { %s939_s8 = scalar_lea.hbm %s1148_s1, %s926_s30  ;;  %s653_s6 = scalar_lea.hbm %s1148_s1, 256 }
  0x22   : > { %s648_s19 = scalar_lea.hbm %s939_s8, 128  ;;  %p654_p7 = scmp.lt.u32.totalorder %s939_s8, %s1148_s1 }
  0x23   : > { %p649_p3 = scmp.ne.s32.totalorder %s939_s8, %s648_s19  ;;  %p655_p10 = scmp.lt.u32.totalorder %s653_s6, %s648_s19 }
  0x24   : > { %p657_p12 = scmp.lt.u32.totalorder %s648_s19, %s939_s8 }
  0x25   : > { %p651_p5 = pnand %p952_p4, %p649_p3  ;;  %p656_p13 = por %p655_p10, %p654_p7 }
  0x27   : > { %p652_p6 = pneg %p651_p5  ;;  %p658_p1 = por %p657_p12, %p656_p13 }
  0x29   : > { %p659_p2 = pnand %p658_p1, %p652_p6 }
  0x2b   : > { %662 = shalt.err (!%p659_p2)
}
  0x2c   : > { %s663_s5 = scalar_lea.vmem %s943_s10, 128  ;;  %s826_s22 = smov [#allocation7]  }
  0x2d   : > { %p664_p3 = scmp.ne.s32.totalorder %s943_s10, %s663_s5  ;;  %s668_s23 = sshll.u32 %s826_s22, 4  ;;  %s669_s23 = int_to_ptr.vmem [resolvable:$false] %s668_s23 }
  0x2e   : > { %s670_s7 = scalar_lea.vmem %s669_s23, 256  ;;  %p671_p9 = scmp.lt.s32.totalorder %s943_s10, %s669_s23 }
  0x2f   : > { %p666_p5 = pnand %p664_p3, %p952_p4  ;;  %p672_p8 = scmp.lt.s32.totalorder %s670_s7, %s663_s5 }
  0x31   : > { %p667_p11 = pneg %p666_p5  ;;  %p673_p7 = por %p672_p8, %p671_p9 }
  0x33   : > { %p674_p10 = pnand %p673_p7, %p667_p11 }
  0x35   : > { %677 = shalt.err (!%p674_p10)
}
  0x36   : > { %572 = dma.hbm_to_vmem [thread:$0]  (!%p930_p0), %s939_s8, 128, %s943_s10, %s946_s11  }
  0x37   : > { %p1150_p12 = scmp.lt.s32.totalorder %s824_s17, 3  ;;  %p1151_p1 = scmp.ge.s32.totalorder %s824_s17, 1 }
  0x38   : > { %s988_s5 = scalar_lea.hbm %s1130_s0, %s926_s30  ;;  %s166_s22 = scalar_lea.vmem [#allocation4], %s923_s29 }
  0x39   : > { %p980_p2 = pnand %p1151_p1, %p1150_p12  ;;  %s174_s23 = sshll.u32 %s166_s22, 4  ;;  %s991_s23 = int_to_ptr.vmem [resolvable:$true] %s174_s23 }
  0x3a   : > { %s997_s7 = scalar_lea.hbm %s1132_s2, %s926_s30  ;;  %s163_s1 = scalar_lea.sflag [#allocation5], %s162_s28 }
  0x3b   : > { %s1152_s19 = scalar_select %p980_p2, 1, 0 }
  0x3c   : > { %s678_s20 = scalar_lea.hbm %s988_s5, 128  ;;  %s683_s16 = scalar_lea.hbm %s1130_s0, 256 }
  0x3d   : > { %p679_p8 = scmp.ne.s32.totalorder %s988_s5, %s678_s20  ;;  %p684_p6 = scmp.lt.u32.totalorder %s988_s5, %s1130_s0 }
  0x3e   : > { %p685_p13 = scmp.lt.u32.totalorder %s683_s16, %s678_s20  ;;  %p687_p5 = scmp.lt.u32.totalorder %s678_s20, %s988_s5 }
  0x3f   : > { %p681_p9 = pnand %p679_p8, %p952_p4 }
  0x40   : > { %p686_p3 = por %p685_p13, %p684_p6 }
  0x41   : > { %p682_p11 = pneg %p681_p9 }
  0x42   : > { %p688_p7 = por %p687_p5, %p686_p3 }
  0x44   : > { %p689_p10 = pnand %p688_p7, %p682_p11 }
  0x46   : > { %692 = shalt.err (!%p689_p10)
}
  0x47   : > { %s693_s28 = scalar_lea.vmem %s991_s23, 128  ;;  %s827_s30 = smov [#allocation4]  }
  0x48   : > { %p694_p12 = scmp.ne.s32.totalorder %s991_s23, %s693_s28  ;;  %s698_s8 = sshll.u32 %s827_s30, 4  ;;  %s699_s8 = int_to_ptr.vmem [resolvable:$false] %s698_s8 }
  0x49   : > { %s700_s26 = scalar_lea.vmem %s699_s8, 256  ;;  %p701_p9 = scmp.lt.s32.totalorder %s991_s23, %s699_s8 }
  0x4a   : > { %p696_p1 = pnand %p694_p12, %p952_p4  ;;  %p702_p2 = scmp.lt.s32.totalorder %s700_s26, %s693_s28 }
  0x4c   : > { %p697_p8 = pneg %p696_p1  ;;  %p703_p6 = por %p702_p2, %p701_p9 }
  0x4e   : > { %p704_p13 = pnand %p703_p6, %p697_p8 }
  0x50   : > { %707 = shalt.err (!%p704_p13)
}
  0x51   : > { %569 = dma.hbm_to_vmem [thread:$0]  (!%p930_p0), %s988_s5, 128, %s991_s23, %s163_s1  }
  0x52   : > { %s204_s16 = scalar_lea.vmem [#allocation9], %s923_s29  ;;  %s708_s10 = scalar_lea.hbm %s997_s7, 128 }
  0x53   : > { %s212_s20 = sshll.u32 %s204_s16, 4  ;;  %p709_p11 = scmp.ne.s32.totalorder %s997_s7, %s708_s10  ;;  %s213_s20 = int_to_ptr.vmem [resolvable:$true] %s212_s20 }
  0x54   : > { %s713_s22 = scalar_lea.hbm %s1132_s2, 256  ;;  %p714_p5 = scmp.lt.u32.totalorder %s997_s7, %s1132_s2 }
  0x55   : > { %p711_p2 = pnand %p709_p11, %p952_p4  ;;  %p715_p7 = scmp.lt.u32.totalorder %s713_s22, %s708_s10 }
  0x56   : > { %p717_p12 = scmp.lt.u32.totalorder %s708_s10, %s997_s7 }
  0x57   : > { %p712_p3 = pneg %p711_p2  ;;  %p716_p10 = por %p715_p7, %p714_p5 }
  0x59   : > { %p718_p1 = por %p717_p12, %p716_p10 }
  0x5b   : > { %p719_p8 = pnand %p718_p1, %p712_p3 }
  0x5d   : > { %722 = shalt.err (!%p719_p8)
}
  0x5e   : > { %s723_s1 = scalar_lea.vmem %s213_s20, 128  ;;  %s828_s29 = smov [#allocation9]  }
  0x5f   : > { %p724_p9 = scmp.ne.s32.totalorder %s213_s20, %s723_s1  ;;  %s728_s5 = sshll.u32 %s828_s29, 4  ;;  %s729_s5 = int_to_ptr.vmem [resolvable:$false] %s728_s5 }
  0x60   : > { %s730_s23 = scalar_lea.vmem %s729_s5, 256  ;;  %p731_p11 = scmp.lt.s32.totalorder %s213_s20, %s729_s5 }
  0x61   : > { %p726_p6 = pnand %p724_p9, %p952_p4  ;;  %p732_p2 = scmp.lt.s32.totalorder %s730_s23, %s723_s1 }
  0x63   : > { %p727_p13 = pneg %p726_p6  ;;  %p733_p0 = por %p732_p2, %p731_p11 }
  0x65   : > { %p734_p5 = pnand %p733_p0, %p727_p13 }
  0x67   : > { %737 = shalt.err (!%p734_p5)
}
  0x68   : > { %p1153_p7 = scmp.ne.s32.totalorder %s1147_s4, 0  ;;  %p1154_p3 = scmp.ne.s32.totalorder %s1152_s19, 0 }
  0x69   : > { %s1044_s21 = sand.u32 (!%p1154_p3), 1, %s808_s13   ;;  %p1155_p0 = scmp.ne.s32.totalorder (!%p1154_p3), %s1143_s24, 0 }
  0x6a   : > { %575 = dma.hbm_to_vmem [thread:$0]  (!%p1153_p7), %s997_s7, 128, %s213_s20, %s946_s11  }
  0x6b   : > { %221 = sbr.rel (%p1154_p3) target bundleno = 689 (0x2b1), region = 32  ;;  %s1047_s8 = sshll.u32 (!%p1154_p3), %s1044_s21, 3 }
  0x6c   : > { %s224_s26 = scalar_lea.sflag (!%p1154_p3), [#allocation5], %s1044_s21  ;;  %s227_s16 = scalar_lea.vmem (!%p1154_p3), [#allocation4], %s1047_s8 }
  0x72   : > { %791 = dma.done.wait (%p1155_p0), %s224_s26, 128  }
  0x73   : > { %793 = vsyncadd (%p1155_p0), %s224_s26, 4294967168  ;;  %s232_s4 = sand.u32 1, %s883_s18   ;;  %s236_s19 = scalar_lea.vmem [#allocation7], %s1047_s8 }
  0x74   : > { %s233_s11 = scalar_lea.sflag [#allocation8], %s232_s4 }
  0x75   : > { %795 = dma.done.wait (%p1155_p0), %s233_s11, 256  }
  0x76   : > { %797 = vsyncadd (%p1155_p0), %s233_s11, 4294967040  ;;  %v829_v0 = vmov 0   ;;  %vm291_vm0 = vcmask 261120   ;;  %v288_v1 = vld [vmem:[%s227_s16] sm:$0xff]  ;;  %v289_v2 = vld [vmem:[%s236_s19] sm:$0xff]  ;;  %s245_s7 = scalar_lea.vmem [#allocation9], %s1047_s8  ;;  %v303_v17 = vlaneseq }
  0x77   : > { %632 = vset.pattern.permute.xlu1 %v829_v0  ;;  %633 = vset.pattern.permute.xlu0 %v829_v0  ;;  %v290_v3 = vld [vmem:[%s245_s7] sm:$0xff]  ;;  %v292_v4 = vsel %vm291_vm0, %v288_v1, -inf  ;;  %v322_v5 = vsel %vm291_vm0, %v289_v2, -inf  ;;  %vm285_vm2 = vcmask 7168   ;;  %s548_s18 = sshll.u32 %s816_s15, 3  ;;  %v830_v30 = vmov 0.0  }
  0x78   : > { %306 = vperm.xlu1 %632, %v290_v3   ;;  %293 = vmax.xlane.f32.xlu0 %v292_v4  ;;  %v304_v21 = vand.u32 127, %v303_v17  ;;  %v346_v29 = vshrl.u32 %v303_v17, 7  ;;  %286 = vst.msk [vmem:[#allocation2] sm:$0xff] %vm285_vm2, %v830_v30  ;;  %287 = vst.msk [vmem:[#allocation3] sm:$0xff] %vm285_vm2, %v830_v30  ;;  %v347_v31 = vstv %s548_s18  ;;  %s551_s28 = sshll.u32 %s816_s15, 7  ;;  %s277_s1 = scalar_lea.vmem [#allocation10], %s1047_s8 }
  0x79   : > { %s409_s29 = sshll.u32 %s277_s1, 4  ;;  %s1081_s16 = scalar_lea.hbm %s1133_s3, %s551_s28  ;;  %s1083_s29 = int_to_ptr.vmem [resolvable:$true] %s409_s29 }
  0x7a   : > { %v348_v32 = vadd.s32 %v347_v31, %v346_v29  ;;  %s396_s4 = scalar_lea.sflag [#allocation6], %s1044_s21  ;;  %s738_s11 = scalar_lea.vmem %s1083_s29, 128 }
  0x7b   : > { %p739_p4 = scmp.ne.s32.totalorder %s1083_s29, %s738_s11  ;;  %p1156_p10 = scmp.ne.s32.totalorder %s1144_s25, 0 }
  0x7c   : > { %323 = vmax.xlane.f32.xlu0 %v322_v5  ;;  %vm349_vm3 = vcmp.lt.s32.totalorder %v348_v32, 8  ;;  %s831_s15 = smov [#allocation10]  }
  0x7d   : > { %v549_v33 = vsel %vm349_vm3, 1.0, %v830_v30  ;;  %p740_p12 = pnand %p739_p4, %p1156_p10  ;;  %s742_s8 = sshll.u32 %s831_s15, 4  ;;  %s743_s8 = int_to_ptr.vmem [resolvable:$false] %s742_s8 }
  0x7e   : > { %s744_s19 = scalar_lea.vmem %s743_s8, 256  ;;  %p745_p8 = scmp.lt.s32.totalorder %s1083_s29, %s743_s8 }
  0x7f   : > { %v358_v50 = vld [vmem:[#allocation3] sm:$0xff]  ;;  %v354_v52 = vld [vmem:[#allocation2] sm:$0xff]  ;;  %p741_p1 = pneg %p740_p12  ;;  %p746_p9 = scmp.lt.s32.totalorder %s744_s19, %s738_s11 }
  0x81   : > { %p747_p6 = por %p746_p9, %p745_p8 }
  0x83   : > { %p748_p13 = pnand %p747_p6, %p741_p1 }
  0xf7   : > { %v307_v23 = vpop.permute.xlu1 %306 }
  0xf8   : > { %vm308_vm1 = vcmp.eq.s32.totalorder %v304_v21, %v307_v23 }
 0x105   : > { %v294_v6 = vpop.xlane.xlu0 %293 }
 0x106   : > { %v295_v7 = vsub.f32 %v288_v1, %v294_v6 }
 0x108   : > { %v314_v8 = vmul.f32 0.25, %v295_v7  ;;  %v296_v13 = vmul.f32 1.442695, %v295_v7  ;;  %v309_v27 = vsel %vm308_vm1, %v295_v7, 0.0 }
 0x109   : > { %v324_v9 = vpop.xlane.xlu0 %323  ;;  %v310_v28 = vsel %vm291_vm0, %v309_v27, 0.0 }
 0x10a   : > { %v315_v10 = vmul.f32 1.442695, %v314_v8  ;;  %v325_v11 = vsub.f32 %v289_v2, %v324_v9 }
 0x10c   : > { %634 = vpow2.f32 %v315_v10  ;;  %v326_v12 = vmul.f32 0.25, %v325_v11 }
 0x10e   : > { %v327_v14 = vmul.f32 1.442695, %v326_v12  ;;  %v334_v22 = vsub.f32 %v326_v12, %v314_v8 }
 0x110   : > { %636 = vpow2.f32 %v327_v14 }
 0x111   : > { %638 = vpow2.f32 %v296_v13 }
 0x116   : > { %v635_v15 = vpop.eup %634 }
 0x117   : > { %v317_v16 = vsel %vm291_vm0, %v635_v15, 0.0 }
 0x118   : > { %318 = vadd.xlane.f32.xlu1 %v317_v16 }
 0x11a   : > { %v637_v18 = vpop.eup %636 }
 0x11b   : > { %v329_v19 = vsel %vm291_vm0, %v637_v18, 0.0  ;;  %v639_v20 = vpop.eup %638  ;;  %v335_v25 = vmul.f32 %v637_v18, %v334_v22 }
 0x11c   : > { %330 = vadd.xlane.f32.xlu0 %v329_v19  ;;  %v298_v24 = vsel %vm291_vm0, %v639_v20, 0.0 }
 0x11d   : > { %v336_v26 = vsel %vm291_vm0, %v335_v25, 0.0 }
 0x120   : > { %299 = vadd.xlane.f32.xlu0 %v298_v24 }
 0x124   : > { %337 = vadd.xlane.f32.xlu0 %v336_v26 }
 0x128   : > { %311 = vadd.xlane.f32.xlu0 %v310_v28 }
 0x1a5   : > { %v319_v34 = vpop.xlane.xlu1 %318 }
 0x1a6   : > { %640 = vlog2.f32 %v319_v34 }
 0x1a9   : > { %v331_v35 = vpop.xlane.xlu0 %330 }
 0x1aa   : > { %642 = vlog2.f32 %v331_v35 }
 0x1ab   : > { %644 = vrcp.f32 %v331_v35 }
 0x1ad   : > { %v300_v36 = vpop.xlane.xlu0 %299 }
 0x1ae   : > { %646 = vlog2.f32 %v300_v36 }
 0x1b0   : > { %v641_v37 = vpop.eup %640 }
 0x1b1   : > { %v338_v39 = vpop.xlane.xlu0 %337  ;;  %v321_v41 = vmul.f32 0.6931472, %v641_v37 }
 0x1b4   : > { %v643_v38 = vpop.eup %642 }
 0x1b5   : > { %v645_v40 = vpop.eup %644  ;;  %v333_v44 = vmul.f32 0.6931472, %v643_v38  ;;  %v312_v48 = vpop.xlane.xlu0 %311 }
 0x1b6   : > { %v340_v42 = vmul.f32 %v645_v40, %v338_v39 }
 0x1b8   : > { %v647_v43 = vpop.eup %646  ;;  %v341_v45 = vadd.f32 %v340_v42, %v321_v41 }
 0x1b9   : > { %v302_v46 = vmul.f32 0.6931472, %v647_v43 }
 0x1ba   : > { %v342_v47 = vsub.f32 %v341_v45, %v333_v44 }
 0x1bb   : > { %v313_v49 = vsub.f32 %v302_v46, %v312_v48 }
 0x1bc   : > { %v353_v51 = vmul.f32 %v549_v33, %v342_v47 }
 0x1bd   : > { %v352_v53 = vmul.f32 %v549_v33, %v313_v49 }
 0x1be   : > { %v359_v54 = vadd.f32 %v358_v50, %v353_v51 }
 0x1bf   : > { %v355_v55 = vadd.f32 %v354_v52, %v352_v53 }
 0x1c0   : > { %360 = vst.msk [vmem:[#allocation3] sm:$0xff] %vm285_vm2, %v359_v54 }
 0x1c1   : > { %357 = vst.msk [vmem:[#allocation2] sm:$0xff] %vm285_vm2, %v355_v55 }
 0x1c7   : > { %v375_v58 = vld [vmem:[#allocation3] sm:$0xff] }
 0x1c8   : > { %v364_v56 = vld [vmem:[#allocation2] sm:$0xff]  ;;  %v376_v59 = vsel %vm285_vm2, %v375_v58, 0.0 }
 0x1c9   : > { %v365_v57 = vsel %vm285_vm2, %v364_v56, 0.0 }
 0x1ca   : > { %366 = vadd.xlane.f32.xlu0 %v365_v57 }
 0x1ce   : > { %377 = vadd.xlane.f32.xlu0 %v376_v59 }
 0x257   : > { %v367_v60 = vpop.xlane.xlu0 %366 }
 0x258   : > { %v368_v61 = vrot.slane %v367_v60, 4 }
 0x25a   : > { %v369_v62 = vadd.f32 %v368_v61, %v367_v60 }
 0x25b   : > { %v378_v63 = vpop.xlane.xlu0 %377 }
 0x25c   : > { %v370_v0 = vrot.slane %v369_v62, 2  ;;  %v379_v1 = vrot.slane %v378_v63, 4 }
 0x25e   : > { %v380_v2 = vadd.f32 %v379_v1, %v378_v63  ;;  %v371_v3 = vadd.f32 %v370_v0, %v369_v62 }
 0x260   : > { %v381_v4 = vrot.slane %v380_v2, 2  ;;  %v372_v5 = vrot.slane %v371_v3, 1 }
 0x262   : > { %v382_v6 = vadd.f32 %v381_v4, %v380_v2  ;;  %v373_v7 = vadd.f32 %v372_v5, %v371_v3 }
 0x264   : > { %554 = vpush %v373_v7  ;;  %v383_v8 = vrot.slane %v382_v6, 1 }
 0x266   : > { %v384_v9 = vadd.f32 %v383_v8, %v382_v6 }
 0x268   : > { %556 = vpush %v384_v9 }
 0x295   : > { %s555_s24 = spop %554 }
 0x296   : > { %s386_s20 = smul.f32 0.125, %s555_s24 }
 0x298   : > { %s390_s22 = smul.f32 0.3, %s386_s20 }
 0x299   : > { %s557_s10 = spop %556 }
 0x29a   : > { %s387_s6 = smul.f32 0.00390625, %s557_s10 }
 0x29c   : > { %s388_s9 = smul.f32 32.0, %s387_s6 }
 0x29e   : > { %s389_s30 = smul.f32 0.7, %s388_s9 }
 0x2a0   : > { %s391_s5 = sadd.f32 %s390_s22, %s389_s30 }
 0x2a2   : > { %v392_v10 = vstv %s391_s5 }
 0x2a3   : > { %394 = vst [vmem:[%s277_s1] sm:$0xff] %v392_v10 }
 0x2a4   : > { %751 = shalt.err (!%p748_p13)
}
 0x2a5   : > { %s752_s21 = scalar_lea.hbm %s1081_s16, 128  ;;  %s756_s24 = scalar_lea.hbm %s1133_s3, 256 }
 0x2a6   : > { %p753_p11 = scmp.ne.s32.totalorder %s1081_s16, %s752_s21  ;;  %p757_p7 = scmp.lt.u32.totalorder %s1081_s16, %s1133_s3 }
 0x2a7   : > { %p758_p3 = scmp.lt.u32.totalorder %s756_s24, %s752_s21  ;;  %p760_p4 = scmp.lt.u32.totalorder %s752_s21, %s1081_s16 }
 0x2a8   : > { %p754_p2 = pnand %p753_p11, %p1156_p10 }
 0x2a9   : > { %p759_p0 = por %p758_p3, %p757_p7 }
 0x2aa   : > { %p755_p5 = pneg %p754_p2 }
 0x2ab   : > { %p761_p12 = por %p760_p4, %p759_p0 }
 0x2ad   : > { %p762_p1 = pnand %p761_p12, %p755_p5 }
 0x2af   : > { %765 = shalt.err (!%p762_p1)
}
 0x2b0   : > { %564 = dma.vmem_to_hbm [thread:$0]  (%p1156_p10), %s1083_s29, 128, %s1081_s16, %s396_s4  }
 0x2b1 PF: > { %s421_s6 = sand.u32 1, %s804_s12   ;;  %p1157_p8 = scmp.ne.s32.totalorder %s1146_s27, 0 }
 0x2b2   : > { %p1158_p9 = scmp.ge.s32.totalorder %s824_s17, 2  ;;  %s422_s9 = scalar_lea.sflag [#allocation6], %s421_s6 }
 0x2b4   : > { %p577_p6 = pnand %p1158_p9, %p1157_p8 }
 0x2b6   : > { %799 = dma.done.wait (!%p577_p6), %s422_s9, 128  }
 0x2b7   : > { %801 = vsyncadd (!%p577_p6), %s422_s9, 4294967168  ;;  %s22_s17 = sadd.s32 1, %s824_s17   ;;  %s1159_s25 = sld [smem:[#allocation16_spill]] }
 0x2b8   : > { %p19_p13 = scmp.ge.s32.totalorder %s22_s17, 4   ;;  %s1160_s15 = sld [smem:[#allocation14_spill]] }
 0x2b9   : > { %s1161_s16 = sld [smem:[#allocation15_spill]]  ;;  %s1162_s12 = smov %s808_s13 }
 0x2ba   : > { %s1163_s13 = smov %s812_s14  ;;  %21 = sbr.rel (!%p19_p13) target bundleno = 10 (0xa), region = 109 }
 0x2bd   : > { %s1164_s14 = smov %s1159_s25 }
 0x2c1   :  { %427 = vsyncpa [#allocation5], 1 }
 0x2c2   :  { %429 = vsyncpa [#allocation5 + $0x1], 1 }
 0x2c3   :  { %430 = vsyncpa [#allocation8], 1 }
 0x2c4   :  { %432 = vsyncpa [#allocation8 + $0x1], 1 }
 0x2c5   :  { %433 = vsyncpa [#allocation6], 1 }
 0x2c6   :  { %435 = vsyncpa [#allocation6 + $0x1], 1 }

</bundles_post_ra>
